<compile_context>
chip_gen: v6e
topology: v6e:2x2x1
jax: 0.10.0
libtpu: 0.0.40
codegen_flags: <defaults>
</compile_context>

<pallas_src>
import jax
import jax.numpy as jnp
from jax.experimental import pallas as pl
from jax.experimental.pallas import tpu as pltpu


def sage_conv2_kernel(x_ref, a_ref, wcat_ref, blin_ref, atti_ref, attj_ref,
                      bias_ref, o_ref):
    """Whole forward in one invocation (everything fits in a few vregs).

    x_ref    : (N, C_in)  node features
    a_ref    : (N, N)     dense adjacency (duplicate edges summed, coo coalesce)
    wcat_ref : (C_in, 2F) [self.weight | self.lin.weight^T]
    blin_ref : (1, 2F)    [0_F | self.lin.bias]     (bias only on the x_i half)
    atti_ref : (1, 2F)    [0_F | attention[:F]]     (pairs with the x_i half)
    attj_ref : (1, 2F)    [attention[F:] | 0_F]     (pairs with the x_j row)
    bias_ref : (1, N)     self.bias, lane-dense     (requires F == N)
    o_ref    : (1, N)     output, lane-dense
    """
    n = a_ref.shape[0]
    two_f = wcat_ref.shape[1]

    x = x_ref[...]
    a = a_ref[...]

    # deg = sparse.sum(adj, dim=1); deg_inv_sqrt = deg ** -0.5  (deg > 0 holds
    # because the wrapper adds self-loops; matches the reference otherwise).
    deg = jnp.sum(a, axis=1, keepdims=True)                       # (N, 1)
    dinv = jax.lax.rsqrt(deg)                                     # (N, 1)

    # Identity masks: relayout tiny per-node vectors between sublane and lane
    # orientation with a masked reduction instead of a transpose / 1-wide dot.
    eye_nn = (jax.lax.broadcasted_iota(jnp.int32, (n, n), 0) ==
              jax.lax.broadcasted_iota(jnp.int32, (n, n), 1)
              ).astype(jnp.float32)                               # (N, N)
    eye_nf = (jax.lax.broadcasted_iota(jnp.int32, (n, two_f), 0) ==
              jax.lax.broadcasted_iota(jnp.int32, (n, two_f), 1)
              ).astype(jnp.float32)                               # (N, 2F), 1 only for k < F

    dinv_row = jnp.sum(eye_nn * dinv, axis=0, keepdims=True)      # (1, N)
    # s = adj @ deg_inv_sqrt  -> VPU broadcast-multiply + lane reduction
    s = jnp.sum(a * dinv_row, axis=1, keepdims=True)              # (N, 1)
    s_row = jnp.sum(eye_nn * s, axis=0, keepdims=True)            # (1, N)

    # Single fused MXU matmul: z = [x @ W | x @ lin.weight^T]
    z = jnp.dot(x, wcat_ref[...], preferred_element_type=jnp.float32)  # (N, 2F)
    zb = z + blin_ref[...]                  # lin bias added to the x_i half only

    # norm = s * dinv^T is rank-1  =>  x_j[i, :] = s[i] * row,
    # with row = sum_j dinv[j] * (x@W)[j, :]  (the first F lanes of rowv).
    rowv = jnp.sum(dinv * zb, axis=0, keepdims=True)              # (1, 2F)

    # alpha = leaky_relu(cat([x_i, x_j], -1) @ attention, 0.2)   (heads = 1)
    #       = leaky_relu(x_i . att[:F] + s * (row . att[F:]))
    c_j = jnp.sum(rowv * attj_ref[...], axis=1, keepdims=True)    # (1, 1)
    p_i = jnp.sum(zb * atti_ref[...], axis=1, keepdims=True)      # (N, 1)
    q = p_i + s * c_j                                             # (N, 1)
    alpha = jnp.where(q >= 0.0, q, 0.2 * q)                       # (N, 1)
    # TODO(synk): F.dropout(p=0.6) is training-mode only; inference = identity.

    # x_j @ alpha = s * (row . alpha); row.alpha pairs feature k with node k,
    # which is exactly the module's F == N quirk (eye_nf masks k >= F lanes).
    prod = eye_nf * alpha * rowv                                  # (N, 2F)
    d = jnp.sum(jnp.sum(prod, axis=1, keepdims=True),
                axis=0, keepdims=True)                            # (1, 1)

    # relu(x + bias), stored lane-dense as (1, N)
    o_ref[...] = jnp.maximum(s_row * d + bias_ref[...], 0.0)


def _full_spec(shape):
    return pl.BlockSpec(shape, lambda i: (0,) * len(shape))


def sage_conv2_forward(x, edge_index, params):
    """Glue: dense adjacency, fused/padded params, single pallas_call."""
    N, _ = x.shape
    W = params["weight"].astype(jnp.float32)          # (C_in, F)
    Wlin = params["lin_w"].astype(jnp.float32)        # (F, C_in)
    blin = params["lin_b"].astype(jnp.float32)        # (F,)
    att = params["attention"].astype(jnp.float32)     # (2F, 1)
    bias = params["bias"].astype(jnp.float32)         # (F,)
    F = W.shape[1]
    assert F == N, "original module requires out_channels*heads == num_nodes"
    assert att.shape[1] == 1, "kernel specializes the module's heads == 1 path"

    # sparse_coo_tensor(ones) coalesces duplicate edges by summing -> .add(1.0)
    A = jnp.zeros((N, N), jnp.float32).at[edge_index[0], edge_index[1]].add(1.0)

    zf = jnp.zeros((1, F), jnp.float32)
    w_cat = jnp.concatenate([W, Wlin.T], axis=1)                      # (C_in, 2F)
    blin_pad = jnp.concatenate([zf, blin.reshape(1, F)], axis=1)      # (1, 2F)
    att_i = jnp.concatenate([zf, att[:F, 0].reshape(1, F)], axis=1)   # (1, 2F)
    att_j = jnp.concatenate([att[F:, 0].reshape(1, F), zf], axis=1)   # (1, 2F)
    bias_row = bias.reshape(1, N)

    inputs = (x.astype(jnp.float32), A, w_cat, blin_pad, att_i, att_j, bias_row)

    out = pl.pallas_call(
        sage_conv2_kernel,
        out_shape=jax.ShapeDtypeStruct((1, N), jnp.float32),
        grid=(1,),
        in_specs=[_full_spec(a.shape) for a in inputs],
        out_specs=_full_spec((1, N)),
        compiler_params=pltpu.CompilerParams(
            dimension_semantics=("arbitrary",)),
    )(*inputs)
    return out.reshape(N)


def reference_forward(x, edge_index, params):
    """Pure-JAX transcription of the PyTorch forward (no Pallas), for checking."""
    N = x.shape[0]
    W, Wlin, blin, att, bias = (params["weight"], params["lin_w"],
                                params["lin_b"], params["attention"],
                                params["bias"])
    A = jnp.zeros((N, N), jnp.float32).at[edge_index[0], edge_index[1]].add(1.0)
    deg = A.sum(axis=1)
    dinv = deg ** -0.5
    norm = dinv * (A @ dinv[:, None])                 # (N, N): dinv[j] * s[i]
    xj = norm @ (x @ W)
    xi = x @ Wlin.T + blin
    alpha = jax.nn.leaky_relu(
        jnp.concatenate([xi, xj], axis=-1) @ att, negative_slope=0.2).reshape(-1)
    return jax.nn.relu(xj @ alpha + bias)


def init_params(key, in_channels, out_channels, heads=1):
    F = out_channels * heads
    k1, k2, k3, k4 = jax.random.split(key, 4)

    def xavier_uniform(k, shape):
        fan_in, fan_out = shape
        bound = (6.0 / (fan_in + fan_out)) ** 0.5
        return jax.random.uniform(k, shape, jnp.float32, -bound, bound)

    lin_bound = 1.0 / (in_channels ** 0.5)
    return {
        "weight": xavier_uniform(k1, (in_channels, F)),
        "bias": jnp.zeros((out_channels,), jnp.float32),
        "attention": xavier_uniform(k2, (2 * out_channels, heads)),
        "lin_w": jax.random.uniform(k3, (out_channels, in_channels),
                                    jnp.float32, -lin_bound, lin_bound),
        "lin_b": jax.random.uniform(k4, (out_channels,),
                                    jnp.float32, -lin_bound, lin_bound),
    }


if __name__ == "__main__":
    N, in_channels, out_channels, heads = 8, 4, 8, 1   # out*heads must equal N
    key = jax.random.PRNGKey(0)
    kx, ke1, ke2, kp = jax.random.split(key, 4)

    x = jax.random.normal(kx, (N, in_channels), jnp.float32)

    # deterministic small graph: 16 random edges + self loops (deg >= 1)
    E = 16
    src = jax.random.randint(ke1, (E,), 0, N, dtype=jnp.int32)
    dst = jax.random.randint(ke2, (E,), 0, N, dtype=jnp.int32)
    loops = jnp.arange(N, dtype=jnp.int32)
    edge_index = jnp.stack([jnp.concatenate([src, loops]),
                            jnp.concatenate([dst, loops])])   # (2, 24)

    params = init_params(kp, in_channels, out_channels, heads)

    out = sage_conv2_forward(x, edge_index, params)
    jax.block_until_ready(out)
    assert out.shape == (N,)

    # Sanity-check the rank-1 / fused-matmul algebra against a straight
    # transcription of the PyTorch math (loose tol absorbs MXU f32-pass
    # precision differences; algebra bugs would be O(1) off).
    ref = reference_forward(x, edge_index, params)
    assert jnp.allclose(out, ref, rtol=5e-2, atol=5e-2), (out, ref)

    print("KERNEL_OK")
</pallas_src>

<mosaic_0001>
module attributes {stable_mosaic.version = 11 : i64} {
  func.func @sage_conv2_kernel(%arg0: i32, %arg1: memref<8x4xf32, #tpu.memory_space<vmem>>, %arg2: memref<8x8xf32, #tpu.memory_space<vmem>>, %arg3: memref<4x16xf32, #tpu.memory_space<vmem>>, %arg4: memref<1x16xf32, #tpu.memory_space<vmem>>, %arg5: memref<1x16xf32, #tpu.memory_space<vmem>>, %arg6: memref<1x16xf32, #tpu.memory_space<vmem>>, %arg7: memref<1x8xf32, #tpu.memory_space<vmem>>, %arg8: memref<1x8xf32, #tpu.memory_space<vmem>>) attributes {dimension_semantics = [#tpu.dimension_semantics<arbitrary>], iteration_bounds = array<i64: 1>, scalar_prefetch = 0 : i64, scratch_operands = 0 : i64, tpu.core_type = #tpu.core_type<tc>, window_params = [{pipeline_mode = #tpu.pipeline_mode<synchronous>, transform_indices = @transform_0, window_bounds = array<i64: 8, 4>}, {pipeline_mode = #tpu.pipeline_mode<synchronous>, transform_indices = @transform_1, window_bounds = array<i64: 8, 8>}, {pipeline_mode = #tpu.pipeline_mode<synchronous>, transform_indices = @transform_2, window_bounds = array<i64: 4, 16>}, {pipeline_mode = #tpu.pipeline_mode<synchronous>, transform_indices = @transform_3, window_bounds = array<i64: 1, 16>}, {pipeline_mode = #tpu.pipeline_mode<synchronous>, transform_indices = @transform_4, window_bounds = array<i64: 1, 16>}, {pipeline_mode = #tpu.pipeline_mode<synchronous>, transform_indices = @transform_5, window_bounds = array<i64: 1, 16>}, {pipeline_mode = #tpu.pipeline_mode<synchronous>, transform_indices = @transform_6, window_bounds = array<i64: 1, 8>}, {pipeline_mode = #tpu.pipeline_mode<synchronous>, transform_indices = @transform_7, window_bounds = array<i64: 1, 8>}]} {
    %c0 = arith.constant 0 : index
    %c0_0 = arith.constant 0 : index
    %0 = vector.load %arg1[%c0, %c0_0] : memref<8x4xf32, #tpu.memory_space<vmem>>, vector<8x4xf32>
    %c0_1 = arith.constant 0 : index
    %c0_2 = arith.constant 0 : index
    %1 = vector.load %arg2[%c0_1, %c0_2] : memref<8x8xf32, #tpu.memory_space<vmem>>, vector<8x8xf32>
    %cst = arith.constant dense<0.000000e+00> : vector<8xf32>
    %2 = vector.multi_reduction <add>, %1, %cst [1] : vector<8x8xf32> to vector<8xf32>
    %3 = vector.shape_cast %2 : vector<8xf32> to vector<8x1xf32>
    %4 = math.rsqrt %3 : vector<8x1xf32>
    %5 = tpu.iota {dimensions = array<i32: 0>} : vector<8x8xi32>
    %6 = tpu.iota {dimensions = array<i32: 1>} : vector<8x8xi32>
    %7 = arith.cmpi eq, %5, %6 : vector<8x8xi32>
    %8 = arith.extui %7 : vector<8x8xi1> to vector<8x8xi32>
    %9 = arith.sitofp %8 : vector<8x8xi32> to vector<8x8xf32>
    %10 = tpu.iota {dimensions = array<i32: 0>} : vector<8x16xi32>
    %11 = tpu.iota {dimensions = array<i32: 1>} : vector<8x16xi32>
    %12 = arith.cmpi eq, %10, %11 : vector<8x16xi32>
    %13 = arith.extui %12 : vector<8x16xi1> to vector<8x16xi32>
    %14 = arith.sitofp %13 : vector<8x16xi32> to vector<8x16xf32>
    %15 = vector.broadcast %4 : vector<8x1xf32> to vector<8x8xf32>
    %16 = arith.mulf %9, %15 : vector<8x8xf32>
    %cst_3 = arith.constant dense<0.000000e+00> : vector<8xf32>
    %17 = vector.multi_reduction <add>, %16, %cst_3 [0] : vector<8x8xf32> to vector<8xf32>
    %18 = vector.shape_cast %17 : vector<8xf32> to vector<1x8xf32>
    %19 = vector.broadcast %18 : vector<1x8xf32> to vector<8x8xf32>
    %20 = arith.mulf %1, %19 : vector<8x8xf32>
    %cst_4 = arith.constant dense<0.000000e+00> : vector<8xf32>
    %21 = vector.multi_reduction <add>, %20, %cst_4 [1] : vector<8x8xf32> to vector<8xf32>
    %22 = vector.shape_cast %21 : vector<8xf32> to vector<8x1xf32>
    %23 = vector.broadcast %22 : vector<8x1xf32> to vector<8x8xf32>
    %24 = arith.mulf %9, %23 : vector<8x8xf32>
    %cst_5 = arith.constant dense<0.000000e+00> : vector<8xf32>
    %25 = vector.multi_reduction <add>, %24, %cst_5 [0] : vector<8x8xf32> to vector<8xf32>
    %26 = vector.shape_cast %25 : vector<8xf32> to vector<1x8xf32>
    %c0_6 = arith.constant 0 : index
    %c0_7 = arith.constant 0 : index
    %27 = vector.load %arg3[%c0_6, %c0_7] : memref<4x16xf32, #tpu.memory_space<vmem>>, vector<4x16xf32>
    %cst_8 = arith.constant dense<0.000000e+00> : vector<8x16xf32>
    %28 = tpu.matmul %0, %27, %cst_8 {dimension_numbers = #tpu.dot_dimension_numbers<[1], [0], [0], [1], [0, 0, 1, 1], [], []>} : vector<8x4xf32>, vector<4x16xf32>, vector<8x16xf32> -> vector<8x16xf32>
    %c0_9 = arith.constant 0 : index
    %c0_10 = arith.constant 0 : index
    %29 = vector.load %arg4[%c0_9, %c0_10] : memref<1x16xf32, #tpu.memory_space<vmem>>, vector<1x16xf32>
    %30 = vector.broadcast %29 : vector<1x16xf32> to vector<8x16xf32>
    %31 = arith.addf %28, %30 : vector<8x16xf32>
    %32 = vector.broadcast %4 : vector<8x1xf32> to vector<8x16xf32>
    %33 = arith.mulf %32, %31 : vector<8x16xf32>
    %cst_11 = arith.constant dense<0.000000e+00> : vector<16xf32>
    %34 = vector.multi_reduction <add>, %33, %cst_11 [0] : vector<8x16xf32> to vector<16xf32>
    %35 = vector.shape_cast %34 : vector<16xf32> to vector<1x16xf32>
    %c0_12 = arith.constant 0 : index
    %c0_13 = arith.constant 0 : index
    %36 = vector.load %arg6[%c0_12, %c0_13] : memref<1x16xf32, #tpu.memory_space<vmem>>, vector<1x16xf32>
    %37 = arith.mulf %35, %36 : vector<1x16xf32>
    %cst_14 = arith.constant dense<0.000000e+00> : vector<1xf32>
    %38 = vector.multi_reduction <add>, %37, %cst_14 [1] : vector<1x16xf32> to vector<1xf32>
    %39 = vector.shape_cast %38 : vector<1xf32> to vector<1x1xf32>
    %c0_15 = arith.constant 0 : index
    %c0_16 = arith.constant 0 : index
    %40 = vector.load %arg5[%c0_15, %c0_16] : memref<1x16xf32, #tpu.memory_space<vmem>>, vector<1x16xf32>
    %41 = vector.broadcast %40 : vector<1x16xf32> to vector<8x16xf32>
    %42 = arith.mulf %31, %41 : vector<8x16xf32>
    %cst_17 = arith.constant dense<0.000000e+00> : vector<8xf32>
    %43 = vector.multi_reduction <add>, %42, %cst_17 [1] : vector<8x16xf32> to vector<8xf32>
    %44 = vector.shape_cast %43 : vector<8xf32> to vector<8x1xf32>
    %45 = vector.broadcast %39 : vector<1x1xf32> to vector<8x1xf32>
    %46 = arith.mulf %22, %45 : vector<8x1xf32>
    %47 = arith.addf %44, %46 : vector<8x1xf32>
    %cst_18 = arith.constant 0.000000e+00 : f32
    %48 = vector.broadcast %cst_18 : f32 to vector<8x1xf32>
    %49 = arith.cmpf oge, %47, %48 : vector<8x1xf32>
    %cst_19 = arith.constant 2.000000e-01 : f32
    %50 = vector.broadcast %cst_19 : f32 to vector<8x1xf32>
    %51 = arith.mulf %50, %47 : vector<8x1xf32>
    %52 = arith.select %49, %47, %51 : vector<8x1xi1>, vector<8x1xf32>
    %53 = vector.broadcast %52 : vector<8x1xf32> to vector<8x16xf32>
    %54 = arith.mulf %14, %53 : vector<8x16xf32>
    %55 = vector.broadcast %35 : vector<1x16xf32> to vector<8x16xf32>
    %56 = arith.mulf %54, %55 : vector<8x16xf32>
    %cst_20 = arith.constant dense<0.000000e+00> : vector<8xf32>
    %57 = vector.multi_reduction <add>, %56, %cst_20 [1] : vector<8x16xf32> to vector<8xf32>
    %58 = vector.shape_cast %57 : vector<8xf32> to vector<8x1xf32>
    %cst_21 = arith.constant dense<0.000000e+00> : vector<1xf32>
    %59 = vector.multi_reduction <add>, %58, %cst_21 [0] : vector<8x1xf32> to vector<1xf32>
    %60 = vector.shape_cast %59 : vector<1xf32> to vector<1x1xf32>
    %61 = vector.broadcast %60 : vector<1x1xf32> to vector<1x8xf32>
    %62 = arith.mulf %26, %61 : vector<1x8xf32>
    %c0_22 = arith.constant 0 : index
    %c0_23 = arith.constant 0 : index
    %63 = vector.load %arg7[%c0_22, %c0_23] : memref<1x8xf32, #tpu.memory_space<vmem>>, vector<1x8xf32>
    %64 = arith.addf %62, %63 : vector<1x8xf32>
    %cst_24 = arith.constant 0.000000e+00 : f32
    %65 = vector.broadcast %cst_24 : f32 to vector<1x8xf32>
    %66 = arith.maximumf %64, %65 : vector<1x8xf32>
    %c0_25 = arith.constant 0 : index
    %c0_26 = arith.constant 0 : index
    %67 = vector.load %arg8[%c0_25, %c0_26] : memref<1x8xf32, #tpu.memory_space<vmem>>, vector<1x8xf32>
    tpu.vector_store %arg8[%c0_25, %c0_26], %66 {strides = array<i32>} : memref<1x8xf32, #tpu.memory_space<vmem>>, vector<1x8xf32>,
    return
  }
  func.func @transform_0(%arg0: i32) -> (i32, i32) {
    %c0_i32 = arith.constant 0 : i32
    %c0_i32_0 = arith.constant 0 : i32
    %c0_i32_1 = arith.constant 0 : i32
    return %c0_i32, %c0_i32_0 : i32, i32
  }
  func.func @transform_1(%arg0: i32) -> (i32, i32) {
    %c0_i32 = arith.constant 0 : i32
    %c0_i32_0 = arith.constant 0 : i32
    %c0_i32_1 = arith.constant 0 : i32
    return %c0_i32, %c0_i32_0 : i32, i32
  }
  func.func @transform_2(%arg0: i32) -> (i32, i32) {
    %c0_i32 = arith.constant 0 : i32
    %c0_i32_0 = arith.constant 0 : i32
    %c0_i32_1 = arith.constant 0 : i32
    return %c0_i32, %c0_i32_0 : i32, i32
  }
  func.func @transform_3(%arg0: i32) -> (i32, i32) {
    %c0_i32 = arith.constant 0 : i32
    %c0_i32_0 = arith.constant 0 : i32
    %c0_i32_1 = arith.constant 0 : i32
    return %c0_i32, %c0_i32_0 : i32, i32
  }
  func.func @transform_4(%arg0: i32) -> (i32, i32) {
    %c0_i32 = arith.constant 0 : i32
    %c0_i32_0 = arith.constant 0 : i32
    %c0_i32_1 = arith.constant 0 : i32
    return %c0_i32, %c0_i32_0 : i32, i32
  }
  func.func @transform_5(%arg0: i32) -> (i32, i32) {
    %c0_i32 = arith.constant 0 : i32
    %c0_i32_0 = arith.constant 0 : i32
    %c0_i32_1 = arith.constant 0 : i32
    return %c0_i32, %c0_i32_0 : i32, i32
  }
  func.func @transform_6(%arg0: i32) -> (i32, i32) {
    %c0_i32 = arith.constant 0 : i32
    %c0_i32_0 = arith.constant 0 : i32
    %c0_i32_1 = arith.constant 0 : i32
    return %c0_i32, %c0_i32_0 : i32, i32
  }
  func.func @transform_7(%arg0: i32) -> (i32, i32) {
    %c0_i32 = arith.constant 0 : i32
    %c0_i32_0 = arith.constant 0 : i32
    %c0_i32_1 = arith.constant 0 : i32
    return %c0_i32, %c0_i32_0 : i32, i32
  }
}

</mosaic_0001>

<bundles_post_ra>
// kernel: tpu_custom_call.1
= control target key start
LH: loop header
LB: loop body
LE: loop exit
PB: predicated region body
PF: predicated region fallthrough
CT: control target
= control target key end

     0   :  { %vm73_vm0 = vcmask 1043456   ;;  %v252_v2 = vmov 0.0   ;;  %vm253_vm1 = vmmov 0   ;;  %vm69_vm2 = vcmask 31744   ;;  %s326_s0 = inlined_call_operand.vmem [shape: f32[8,4], index: 0, kind: input, shape index: {}]   ;;  %s327_s1 = inlined_call_operand.vmem [shape: f32[8,8], index: 1, kind: input, shape index: {}]   ;;  %s328_s2 = inlined_call_operand.vmem [shape: f32[4,16], index: 2, kind: input, shape index: {}]   ;;  %s329_s3 = inlined_call_operand.vmem [shape: f32[1,16], index: 3, kind: input, shape index: {}]   ;;  %s330_s4 = inlined_call_operand.vmem [shape: f32[1,16], index: 4, kind: input, shape index: {}]   ;;  %s331_s5 = inlined_call_operand.vmem [shape: f32[1,16], index: 5, kind: input, shape index: {}]   ;;  %s332_s6 = inlined_call_operand.vmem [shape: f32[1,8], index: 6, kind: input, shape index: {}]   ;;  %s333_s7 = inlined_call_operand.hbm [shape: f32[1,8], index: 7, kind: output, shape index: {}]  }
   0x1   :  { %v61_v0 = vld [vmem:[%s328_s2] sm:$0xf]  ;;  %220 = vmatprep.subr.mxu0 %v252_v2  ;;  %222 = vmatprep.mubr.msk.f32.mxu0 %vm253_vm1, %v252_v2  ;;  %vm29_vm3 = vcmask 64512  }
   0x2   :  { %v27_v1 = vld [vmem:[%s326_s0] sm:$0xff] }
   0x3   :  { %v28_v3 = vld [vmem:[%s327_s1] sm:$0xff] }
   0x4   :  { %12 = vsyncpa [#allocation3], 0  ;;  %221 = vmatpush3.msk.msra.mxu0 %vm73_vm0, %v61_v0  ;;  %v30_v4 = vsel %vm29_vm3, %v28_v3, 0.0  ;;  %v34_v6 = vlaneseq  ;;  %v214_v21 = vld [vmem:[%s329_s3] ss:$0 sm:$0xff]  ;;  %vm148_vm5 = vcmask 130048  }
   0x5   :  { %223 = vmatmul.mubr.msk.f32.vlgmr.msra.gmra.mxu0 %vm69_vm2, %v27_v1  ;;  %31 = vadd.xlane.f32.xlu0 %v30_v4  ;;  %v217_v23 = vld [vmem:[%s330_s4] ss:$0 sm:$0xff]  ;;  %vm158_vm6 = vcmask 122880   ;;  %s254_s9 = smov [#allocation2]   ;;  %vm197_vm8 = vcmask 57344  }
   0x6   :  { %v35_v7 = vshrl.u32 %v34_v6, 7  ;;  %v37_v8 = vand.u32 127, %v34_v6  ;;  %v156_v35 = vld [vmem:[%s331_s5] sm:$0x1]  ;;  %s205_s10 = sshll.u32 %s254_s9, 4  ;;  %s206_s10 = int_to_ptr.vmem [resolvable:$true] %s205_s10 }
   0x7   :  { %s230_s11 = scalar_lea.vmem %s206_s10, 16  ;;  %s234_s12 = scalar_lea.vmem %s206_s10, 32 }
   0x8   :  { %vm38_vm4 = vcmp.eq.s32.totalorder %v35_v7, %v37_v8  ;;  %v175_v39 = vsub.s32 0, %v35_v7  ;;  %p231_p0 = scmp.ne.s32.totalorder %s206_s10, %s230_s11  ;;  %p235_p1 = scmp.lt.s32.totalorder %s206_s10, %s206_s10 }
   0x9   :  { %v213_v9 = vsel %vm38_vm4, 1.0, %v252_v2  ;;  %v194_v2 = vld [vmem:[%s332_s6] sm:$0x1]  ;;  %p236_p2 = scmp.lt.s32.totalorder %s234_s12, %s230_s11 }
   0xb   :  { %p237_p3 = por %p236_p2, %p235_p1 }
   0xd   :  { %p238_p4 = pnand %p237_p3, %p231_p0 }
  0x8e   :  { %v32_v5 = vpop.xlane.xlu0 %31 }
  0x8f   :  { %228 = vrsqrt.f32 %v32_v5 }
  0x9c   :  { %v229_v10 = vpop.eup %228 }
  0x9d   :  { %v41_v11 = vmul.f32 %v229_v10, %v213_v9 }
  0x9f   :  { %v42_v12 = vsel %vm29_vm3, %v41_v11, 0.0 }
  0xa0   :  { %v43_v13 = vrot.slane %v42_v12, 4 }
  0xa2   :  { %v44_v14 = vadd.f32 %v43_v13, %v42_v12 }
  0xa4   :  { %v45_v15 = vrot.slane %v44_v14, 2 }
  0xa6   :  { %v46_v16 = vadd.f32 %v45_v15, %v44_v14 }
  0xa8   :  { %v47_v17 = vrot.slane %v46_v16, 1 }
  0xaa   :  { %v48_v18 = vadd.f32 %v47_v17, %v46_v16 }
  0xac   :  { %v49_v19 = vmul.f32 %v48_v18, %v28_v3 }
  0xae   :  { %v50_v20 = vsel %vm29_vm3, %v49_v19, 0.0 }
  0xaf   :  { %51 = vadd.xlane.f32.xlu1 %v50_v20 }
  0xc5   :  { %v143_v22 = vpop.f32.mrf.mxu0 }
  0xc6   :  { %v144_v24 = vadd.f32 %v214_v21, %v143_v22 }
  0xc7   :  { %v224_v25 = vpop.f32.mrf.mxu0 }
  0xc8   :  { %v147_v26 = vmul.f32 %v229_v10, %v144_v24  ;;  %v169_v27 = vmul.f32 %v217_v23, %v144_v24 }
  0xca   :  { %v170_v28 = vsel %vm148_vm5, %v169_v27, 0.0  ;;  %v149_v29 = vsel %vm148_vm5, %v147_v26, 0.0 }
  0xcb   :  { %171 = vadd.xlane.f32.xlu1 %v170_v28  ;;  %v150_v30 = vrot.slane %v149_v29, 4 }
  0xcd   :  { %v151_v31 = vadd.f32 %v150_v30, %v149_v29 }
  0xcf   :  { %v152_v32 = vrot.slane %v151_v31, 2 }
  0xd1   :  { %v153_v33 = vadd.f32 %v152_v32, %v151_v31 }
  0xd3   :  { %v154_v34 = vrot.slane %v153_v33, 1 }
  0xd5   :  { %v155_v36 = vadd.f32 %v154_v34, %v153_v33 }
  0xd7   :  { %v157_v37 = vmul.f32 %v156_v35, %v155_v36 }
  0xd9   :  { %v159_v38 = vsel %vm158_vm6, %v157_v37, 0.0 }
  0xda   :  { %160 = vadd.xlane.f32.xlu0 %v159_v38 }
 0x138   :  { %v52_v40 = vpop.xlane.xlu1 %51 }
 0x139   :  { %v53_v51 = vmul.f32 %v213_v9, %v52_v40 }
 0x13b   :  { %v54_v52 = vsel %vm29_vm3, %v53_v51, 0.0 }
 0x13c   :  { %v55_v53 = vrot.slane %v54_v52, 4 }
 0x13e   :  { %v56_v54 = vadd.f32 %v55_v53, %v54_v52 }
 0x140   :  { %v57_v55 = vrot.slane %v56_v54, 2 }
 0x142   :  { %v58_v58 = vadd.f32 %v57_v55, %v56_v54 }
 0x144   :  { %v59_v61 = vrot.slane %v58_v58, 1 }
 0x146   :  { %v60_v1 = vadd.f32 %v59_v61, %v58_v58 }
 0x154   :  { %v172_v44 = vpop.xlane.xlu1 %171 }
 0x163   :  { %v161_v41 = vpop.xlane.xlu0 %160 }
 0x164   :  { %v176_v42 = vrot.slane %v161_v41, %v175_v39 }
 0x166   :  { %v177_v43 = vmul.f32 %v176_v42, %v52_v40 }
 0x168   :  { %v178_v45 = vadd.f32 %v177_v43, %v172_v44 }
 0x16a   :  { %v180_v46 = vmul.f32 0.2, %v178_v45  ;;  %vm179_vm7 = vcmp.ge.f32.partialorder %v178_v45, 0.0 }
 0x16c   :  { %v181_v47 = vsel %vm179_vm7, %v178_v45, %v180_v46 }
 0x16d   :  { %v182_v48 = vmul.f32 %v213_v9, %v181_v47 }
 0x16f   :  { %v183_v49 = vmul.f32 %v182_v48, %v155_v36 }
 0x171   :  { %v184_v50 = vsel %vm148_vm5, %v183_v49, 0.0 }
 0x172   :  { %185 = vadd.xlane.f32.xlu0 %v184_v50 }
 0x1fb   :  { %v186_v56 = vpop.xlane.xlu0 %185 }
 0x1fc   :  { %v187_v57 = vrot.slane %v186_v56, 4 }
 0x1fe   :  { %v188_v59 = vadd.f32 %v187_v57, %v186_v56 }
 0x200   :  { %v189_v60 = vrot.slane %v188_v59, 2 }
 0x202   :  { %v190_v62 = vadd.f32 %v189_v60, %v188_v59 }
 0x204   :  { %v191_v63 = vrot.slane %v190_v62, 1 }
 0x206   :  { %v192_v0 = vadd.f32 %v191_v63, %v190_v62 }
 0x208   :  { %v193_v3 = vmul.f32 %v192_v0, %v60_v1 }
 0x20a   :  { %v195_v4 = vadd.f32 %v194_v2, %v193_v3 }
 0x20c   :  { %v196_v5 = vmax.f32 %v195_v4, 0.0 }
 0x20e   :  { %198 = vst.msk [vmem:[#allocation2] sm:$0x1] %vm197_vm8, %v196_v5 }
 0x20f   :  { %241 = shalt.err (!%p238_p4)
}
 0x210   :  { %208 = dma.vmem_to_hbm [thread:$0]  %s206_s10, 16, %s333_s7, [#allocation3]  }
 0x211   :  { %250 = dma.done.wait [#allocation3], 16  }
 0x212   :  { %251 = vsyncadd [#allocation3], 4294967280 }
 0x213   :  { %212 = vsyncpa [#allocation3], 1 }

</bundles_post_ra>
